<compile_context>
chip_gen: v7x
topology: tpu7x:2x2x1
jax: 0.10.0
libtpu: 0.0.40
codegen_flags: <defaults>
</compile_context>

<pallas_src>
import math

import jax
import jax.numpy as jnp
from jax.experimental import pallas as pl
from jax.experimental.pallas import tpu as pltpu


# --------------------------------------------------------------------------- #
# Hardware-aware sizing helpers
# --------------------------------------------------------------------------- #

def _tpu_vmem_bytes():
    """Physical VMEM of the current generation; conservative default if the
    query is unavailable (64 MiB == v7x per-TensorCore, safe everywhere)."""
    try:
        return int(pltpu.get_tpu_info().vmem_capacity_bytes)
    except Exception:  # pragma: no cover - query not available on this host
        return 64 << 20


def _budgets():
    vmem = _tpu_vmem_bytes()
    # ~16 MiB blocks on 128 MiB VMEM (v5e/v6e), ~8 MiB on 64 MiB VMEM (v7x).
    block_bytes = min(16 << 20, max(4 << 20, vmem // 8))
    # Leave headroom under physical VMEM for double-buffered in+out tiles.
    vmem_limit = (vmem * 3) // 4
    return block_bytes, vmem_limit


def _sublane_unit(dtype):
    # Native packed sublane tile: 8 rows for 4-byte, 16 for bf16, 32 for int8.
    itemsize = jnp.dtype(dtype).itemsize
    return max(8, 32 // max(itemsize, 1))


# --------------------------------------------------------------------------- #
# Plain tiled lane-dense copy (identity permutation / fallback path)
# --------------------------------------------------------------------------- #

def _copy_kernel(x_ref, o_ref):
    # Pure data movement: one contiguous, lane-dense full-tile copy.
    o_ref[...] = x_ref[...]


def _pick_tiles_2d(n_rows, n_cols, dtype, block_bytes):
    itemsize = jnp.dtype(dtype).itemsize
    su = _sublane_unit(dtype)

    # Lane (last) dim: keep full array width whenever it fits the byte budget
    # (single contiguous HBM segment per DMA); otherwise a 128-multiple tile.
    f_cap = max(128, block_bytes // (su * itemsize))
    if n_cols <= f_cap:
        f_tile = n_cols                       # full extent: always legal
        n_col_blocks = 1
    else:
        f_tile = max(128, (f_cap // 128) * 128)
        n_col_blocks = pl.cdiv(n_cols, f_tile)

    # Sublane (row) dim: fill the remaining budget with a su-multiple tile.
    b_cap = max(su, block_bytes // (f_tile * itemsize))
    if n_rows <= b_cap:
        b_tile = n_rows                       # full extent
    else:
        b_tile = max(su, (b_cap // su) * su)

    # v7x has 2 TensorCores: if the grid would be (1, 1), split the rows so
    # both cores get a block (no-op for small row counts).
    if n_col_blocks == 1 and b_tile == n_rows and n_rows >= 2 * su:
        b_tile = (((n_rows + 1) // 2 + su - 1) // su) * su

    return b_tile, f_tile


def _tiled_copy_2d(x2d, block_bytes, vmem_limit):
    n_rows, n_cols = x2d.shape
    b_tile, f_tile = _pick_tiles_2d(n_rows, n_cols, x2d.dtype, block_bytes)
    grid = (pl.cdiv(n_rows, b_tile), pl.cdiv(n_cols, f_tile))
    return pl.pallas_call(
        _copy_kernel,
        out_shape=jax.ShapeDtypeStruct((n_rows, n_cols), x2d.dtype),
        grid=grid,
        in_specs=[pl.BlockSpec((b_tile, f_tile), lambda i, j: (i, j))],
        out_specs=pl.BlockSpec((b_tile, f_tile), lambda i, j: (i, j)),
        compiler_params=pltpu.CompilerParams(
            dimension_semantics=("parallel", "parallel"),
            vmem_limit_bytes=vmem_limit),
    )(x2d)


# --------------------------------------------------------------------------- #
# Fused permute + flatten kernel (non-identity keep_dims permutation)
# --------------------------------------------------------------------------- #

def _fused_blocks(shape, perm, nk, out_shape):
    """Input / output block shapes and grid for the fused kernel."""
    n = len(shape)
    kept = perm[:nk]                 # == sorted keep_dims
    last_kept = kept[-1]
    in_block = tuple(1 if (a in kept and a != last_kept) else shape[a]
                     for a in range(n))
    out_block = (1,) * (nk - 1) + (shape[last_kept], out_shape[-1])
    grid = tuple(shape[a] for a in kept[:-1])
    return in_block, out_block, grid, kept


def _fused_ok(x, perm, nk, out_shape, block_bytes):
    """Fused path is used only when the blocks are legal (last two input block
    dims full-extent) and fit the per-block VMEM budget."""
    n = x.ndim
    in_block, _, _, _ = _fused_blocks(x.shape, perm, nk, out_shape)
    for a in (n - 1, n - 2):
        if a >= 0 and in_block[a] != x.shape[a]:
            return False
    itemsize = jnp.dtype(x.dtype).itemsize
    return math.prod(in_block) * itemsize <= block_bytes


def _flatten_fused(x, perm, nk, out_shape, vmem_limit):
    """Single-pass permute+flatten: grid over the leading kept dims; each step
    reads one natural-layout slab, transposes it in VMEM and stores one
    lane-dense (full flat width) output slab."""
    n = x.ndim
    in_block, out_block, grid, kept = _fused_blocks(x.shape, perm, nk, out_shape)
    lead_kept = kept[:-1]

    def in_index_map(*g):
        idx = [0] * n
        for i, a in enumerate(lead_kept):
            idx[a] = g[i]
        return tuple(idx)

    def out_index_map(*g):
        return tuple(g) + (0, 0)

    def kernel(x_ref, o_ref):
        # Transpose runs on the XLU slot; the copy stays HBM-bandwidth bound.
        o_ref[...] = jnp.transpose(x_ref[...], perm).reshape(o_ref.shape)

    return pl.pallas_call(
        kernel,
        out_shape=jax.ShapeDtypeStruct(out_shape, x.dtype),
        grid=grid,
        in_specs=[pl.BlockSpec(in_block, in_index_map)],
        out_specs=pl.BlockSpec(out_block, out_index_map),
        compiler_params=pltpu.CompilerParams(
            dimension_semantics=("parallel",) * len(grid),
            vmem_limit_bytes=vmem_limit),
    )(x)


# --------------------------------------------------------------------------- #
# Flatten module
# --------------------------------------------------------------------------- #

class Flatten:
    """Pallas/JAX port of batchflow Flatten: flatten input, optionally keeping
    provided dimensions. The batch dimension (0) is always preserved.

    Default path is the free metadata-only transpose+reshape; `force_kernel`
    routes the data movement through Pallas (fused permute+flatten when the
    permutation is non-trivial, tiled lane-dense copy otherwise).
    """

    def __init__(self, keep_dims=0, force_kernel=False):
        if isinstance(keep_dims, int):
            keep_dims = (keep_dims,)
        if 0 not in keep_dims:
            keep_dims = (0,) + tuple(keep_dims)
        self.keep_dims = sorted(set(keep_dims))
        self.force_kernel = force_kernel

    def __call__(self, x):
        if self.keep_dims[-1] >= x.ndim:
            raise ValueError(
                f'Not enough dimensions in input! keep_dims={self.keep_dims}, '
                f'but input shape is {x.shape}')
        if len(self.keep_dims) == x.ndim:
            return x

        n = x.ndim
        nk = len(self.keep_dims)

        # Compose torch's sequential pairwise `transpose(dim1, dim2)` calls
        # into a single permutation (identity for the default keep_dims=0).
        perm = list(range(n))
        for dim1, dim2 in enumerate(self.keep_dims):
            perm[dim1], perm[dim2] = perm[dim2], perm[dim1]
        perm = tuple(perm)
        identity = perm == tuple(range(n))

        kept_shape = tuple(x.shape[a] for a in perm[:nk])
        flat = math.prod(x.shape[a] for a in perm[nk:])
        out_shape = kept_shape + (flat,)

        if not self.force_kernel:
            # Metadata-only path (free for the default keep_dims=0).
            xt = x if identity else jnp.transpose(x, perm)
            return xt.reshape(out_shape)

        block_bytes, vmem_limit = _budgets()

        if identity:
            # Row-major flatten is metadata-only; the kernel is a lane-dense
            # tiled copy over the 2-D view.
            n_rows = math.prod(kept_shape)
            x2d = x.reshape(n_rows, flat)
            return _tiled_copy_2d(x2d, block_bytes, vmem_limit).reshape(out_shape)

        if _fused_ok(x, perm, nk, out_shape, block_bytes):
            # Fused permute+flatten: one HBM read + one HBM write total.
            return _flatten_fused(x, perm, nk, out_shape, vmem_limit)

        # TODO(synk): also tile the non-kept axes inside the fused kernel so
        # oversized slabs / trailing kept axes avoid this two-pass fallback.
        xt = jnp.transpose(x, perm)
        n_rows = math.prod(kept_shape)
        x2d = xt.reshape(n_rows, flat)
        return _tiled_copy_2d(x2d, block_bytes, vmem_limit).reshape(out_shape)


if __name__ == "__main__":
    key = jax.random.PRNGKey(0)
    # NCHW input: batch=2, channels=4, spatial=16x16.
    x = jax.random.normal(key, (2, 4, 16, 16), dtype=jnp.float32)

    # Default path (keep_dims=0): metadata-only reshape, no kernel.
    y_fast = Flatten(keep_dims=0)(x)
    ref0 = x.reshape(2, -1)
    assert y_fast.shape == (2, 4 * 16 * 16) and y_fast.dtype == x.dtype
    assert jnp.array_equal(y_fast, ref0), "mismatch (reshape path)"

    # Pallas kernel path, identity permutation (tiled lane-dense copy).
    y_k0 = jax.block_until_ready(Flatten(keep_dims=0, force_kernel=True)(x))
    assert y_k0.shape == (2, 4 * 16 * 16) and y_k0.dtype == x.dtype
    assert jnp.array_equal(y_k0, ref0), "mismatch (kernel path, keep_dims=0)"

    # Pallas kernel path, fused permute+flatten (keep_dims=(0, 2)).
    y_k2 = jax.block_until_ready(Flatten(keep_dims=(0, 2), force_kernel=True)(x))
    ref2 = jnp.transpose(x, (0, 2, 1, 3)).reshape(2, 16, -1)
    assert y_k2.shape == (2, 16, 4 * 16) and y_k2.dtype == x.dtype
    assert jnp.array_equal(y_k2, ref2), "mismatch (fused kernel, keep_dims=(0,2))"

    # bf16 input exercises the dtype-aware sublane tiling on the copy path.
    xb = x.astype(jnp.bfloat16)
    y_kb = jax.block_until_ready(Flatten(keep_dims=0, force_kernel=True)(xb))
    assert y_kb.dtype == jnp.bfloat16
    assert jnp.array_equal(y_kb, xb.reshape(2, -1)), "mismatch (bf16 kernel path)"

    print("KERNEL_OK")
</pallas_src>

<mosaic_0001>
module attributes {stable_mosaic.version = 11 : i64} {
  func.func @_copy_kernel(%arg0: i32, %arg1: i32, %arg2: memref<2x1024xf32, #tpu.memory_space<vmem>>, %arg3: memref<2x1024xf32, #tpu.memory_space<vmem>>) attributes {dimension_semantics = [#tpu.dimension_semantics<parallel>, #tpu.dimension_semantics<parallel>], iteration_bounds = array<i64: 1, 1>, scalar_prefetch = 0 : i64, scratch_operands = 0 : i64, tpu.core_type = #tpu.core_type<tc>, window_params = [{transform_indices = @transform_0, window_bounds = array<i64: 2, 1024>}, {transform_indices = @transform_1, window_bounds = array<i64: 2, 1024>}]} {
    %c0 = arith.constant 0 : index
    %c0_0 = arith.constant 0 : index
    %0 = vector.load %arg2[%c0, %c0_0] : memref<2x1024xf32, #tpu.memory_space<vmem>>, vector<2x1024xf32>
    %c0_1 = arith.constant 0 : index
    %c0_2 = arith.constant 0 : index
    %1 = vector.load %arg3[%c0_1, %c0_2] : memref<2x1024xf32, #tpu.memory_space<vmem>>, vector<2x1024xf32>
    tpu.vector_store %arg3[%c0_1, %c0_2], %0 {strides = array<i32>} : memref<2x1024xf32, #tpu.memory_space<vmem>>, vector<2x1024xf32>,
    return
  }
  func.func @transform_0(%arg0: i32, %arg1: i32) -> (i32, i32) {
    %c0_i32 = arith.constant 0 : i32
    return %arg0, %arg1 : i32, i32
  }
  func.func @transform_1(%arg0: i32, %arg1: i32) -> (i32, i32) {
    %c0_i32 = arith.constant 0 : i32
    return %arg0, %arg1 : i32, i32
  }
}

</mosaic_0001>

<bundles_post_ra>
// kernel: tpu_custom_call.1
= control target key start
LH: loop header
LB: loop body
LE: loop exit
PB: predicated region body
PF: predicated region fallthrough
CT: control target
= control target key end

     0   :  { %6 = vsyncpa [#allocation3], 0  ;;  %s126_s0 = inlined_call_operand.hbm [shape: f32[2,1024], index: 0, kind: input, shape index: {}]   ;;  %s127_s1 = inlined_call_operand.hbm [shape: f32[2,1024], index: 1, kind: output, shape index: {}]  }
   0x1   :  { %7 = vsyncpa [#allocation4], 0  ;;  %s90_s6 = smov [#allocation2]   ;;  %s42_s10 = scalar_lea.hbm %s126_s0, 256 }
   0x2   :  { %s14_s7 = sshll.u32 %s90_s6, 4  ;;  %p43_p0 = scmp.ne.s32.totalorder %s126_s0, %s42_s10  ;;  %s15_s7 = int_to_ptr.vmem [resolvable:$true] %s14_s7 }
   0x3   :  { %p46_p1 = scmp.lt.u32.totalorder %s42_s10, %s126_s0 }
   0x5   :  { %p48_p2 = pnand %p46_p1, %p43_p0 }
   0x7   :  { %51 = shalt.err (!%p48_p2)
}
   0x8   :  { %s52_s15 = scalar_lea.vmem %s15_s7, 256  ;;  %p57_p4 = scmp.lt.s32.totalorder %s15_s7, %s15_s7 }
   0x9   :  { %p53_p3 = scmp.ne.s32.totalorder %s15_s7, %s52_s15  ;;  %p58_p5 = scmp.lt.s32.totalorder %s52_s15, %s52_s15 }
   0xb   :  { %p59_p6 = por %p58_p5, %p57_p4 }
   0xd   :  { %p60_p7 = pnand %p59_p6, %p53_p3 }
   0xf   :  { %63 = shalt.err (!%p60_p7)
}
  0x10   :  { %17 = dma.hbm_to_vmem [thread:$0]  %s126_s0, 256, %s15_s7, [#allocation3]  }
  0x11   :  { %86 = dma.done.wait [#allocation3], 256  }
  0x12   :  { %87 = vsyncadd [#allocation3], 4294967040  ;;  %s91_s18 = smov [#allocation5]   ;;  %v21_v0 = vld [vmem:[#allocation2] sm:$0xff]  ;;  %v22_v1 = vld [vmem:[#allocation2 + $0x8] sm:$0xff] }
  0x13   :  { %s31_s19 = sshll.u32 %s91_s18, 4  ;;  %23 = vst [vmem:[#allocation5] sm:$0xff] %v21_v0  ;;  %24 = vst [vmem:[#allocation5 + $0x8] sm:$0xff] %v22_v1  ;;  %s32_s19 = int_to_ptr.vmem [resolvable:$true] %s31_s19 }
  0x14   :  { %s64_s20 = scalar_lea.vmem %s32_s19, 256  ;;  %p69_p9 = scmp.lt.s32.totalorder %s32_s19, %s32_s19 }
  0x15   :  { %p65_p8 = scmp.ne.s32.totalorder %s32_s19, %s64_s20  ;;  %p70_p10 = scmp.lt.s32.totalorder %s64_s20, %s64_s20 }
  0x17   :  { %p71_p11 = por %p70_p10, %p69_p9 }
  0x19   :  { %p72_p12 = pnand %p71_p11, %p65_p8 }
  0x1b   :  { %75 = shalt.err (!%p72_p12)
}
  0x1c   :  { %s76_s0 = scalar_lea.hbm %s127_s1, 256 }
  0x1d   :  { %p77_p13 = scmp.ne.s32.totalorder %s127_s1, %s76_s0  ;;  %p80_p0 = scmp.lt.u32.totalorder %s76_s0, %s127_s1 }
  0x1f   :  { %p82_p1 = pnand %p80_p0, %p77_p13 }
  0x21   :  { %85 = shalt.err (!%p82_p1)
}
  0x22   :  { %34 = dma.vmem_to_hbm [thread:$0]  %s32_s19, 256, %s127_s1, [#allocation4]  }
  0x23   :  { %88 = dma.done.wait [#allocation4], 256  }
  0x24   :  { %89 = vsyncadd [#allocation4], 4294967040 }
  0x25   :  { %38 = vsyncpa [#allocation3], 1 }
  0x26   :  { %39 = vsyncpa [#allocation4], 1 }

</bundles_post_ra>
